<compile_context>
chip_gen: v6e
topology: v6e:2x2x1
jax: 0.10.0
libtpu: 0.0.40
codegen_flags: <defaults>
</compile_context>

<pallas_src>
import functools

import jax
import jax.numpy as jnp
from jax.experimental import pallas as pl
from jax.experimental.pallas import tpu as pltpu

LANES = 128
SUBLANES = 8


def _masked_l1_sum_kernel(p_ref, t_ref, o_ref, *, tr, bps, rows, may_need_mask):
    """Accumulates sum(mask * |p - t|) into a per-core (1, 8, 128) partial."""
    c = pl.program_id(0)   # core-split axis (size 1 on v5e/v6e, 2 on v7x)
    j = pl.program_id(1)   # sequential reduction axis

    @pl.when(j == 0)
    def _():
        o_ref[...] = jnp.zeros_like(o_ref)

    p = p_ref[...].astype(jnp.float32)
    t = t_ref[...].astype(jnp.float32)
    # Keep the mask-multiply (not jnp.where) so NaN/Inf in `pred` where
    # target == 0 still propagates, exactly like torch's pred * mask.
    mask = (t != 0.0).astype(jnp.float32)
    contrib = mask * jnp.abs(p - t)                      # (tr, 128)

    def _accumulate(x):
        # Reduce only across the row-group axis (pure VPU adds; each (8,128)
        # tile maps 1:1, so the reshape is layout-free). The cross-lane XLU
        # reduce is deferred to the tiny jnp epilogue.
        partial = x.reshape(tr // SUBLANES, SUBLANES, LANES).sum(axis=0)
        o_ref[...] += partial[None, :, :]

    if may_need_mask:
        # Only steps whose row range crosses `rows` pay the iota/compare/
        # select; all other steps take the lean branch (pl.when skips the
        # cold path at runtime).
        row0 = (c * bps + j) * tr

        @pl.when(row0 + tr <= rows)
        def _():
            _accumulate(contrib)

        @pl.when(row0 + tr > rows)
        def _():
            local_row = jax.lax.broadcasted_iota(jnp.int32, (tr, 1), 0)
            _accumulate(jnp.where(row0 + local_row < rows, contrib, 0.0))
    else:
        _accumulate(contrib)


def _masked_l1_loss_jnp(pred, target):
    """Pure-jnp fallback for tiny inputs (pallas launch overhead dominates)."""
    mask = (target != 0).astype(jnp.float32)
    diff = pred.astype(jnp.float32) * mask - target.astype(jnp.float32) * mask
    return jnp.mean(jnp.abs(diff))


def _is_v7x():
    """Best-effort chip detection; only used to enable the 2-core split."""
    try:
        kind = jax.devices()[0].device_kind.lower()
    except Exception:
        return False
    return "v7" in kind


def masked_l1_loss(pred, target, *, tile_rows=None, min_kernel_elems=64 * 1024):
    assert pred.shape == target.shape
    n_total = pred.size

    # Small-input fallback: below ~256 KiB the fixed pallas_call + epilogue
    # launches cost more than the stream itself.
    if n_total == 0 or n_total < min_kernel_elems:
        return _masked_l1_loss_jnp(pred, target)

    p_flat = pred.reshape(-1)
    t_flat = target.reshape(-1)
    itemsize = max(jnp.dtype(pred.dtype).itemsize, jnp.dtype(target.dtype).itemsize)

    # Target ~4 MiB per input per grid step (8192 rows f32, 16384 rows bf16)
    # so per-step overhead stays <~12% even at v7x's ~3.2 TB/s HBM BW.
    if tile_rows is None:
        tile_rows = (4 << 20) // (LANES * itemsize)
    tile_rows = max(SUBLANES, (tile_rows // SUBLANES) * SUBLANES)

    # Largest prefix whose row count (at 128 lanes) is a multiple of 8.
    rows_main = (n_total // (SUBLANES * LANES)) * SUBLANES
    n_main = rows_main * LANES

    total = jnp.zeros((), jnp.float32)

    if rows_main > 0:
        tr = min(tile_rows, rows_main)                   # multiple of 8
        total_blocks = (rows_main + tr - 1) // tr

        # Only v7x has two TensorCores; on v5e/v6e a split is a pure serial
        # loop (extra boundary, re-DMA on odd overhang), so disable it there.
        use_core_split = _is_v7x() and total_blocks >= 2
        num_splits = 2 if use_core_split else 1
        bps = (total_blocks + num_splits - 1) // num_splits
        need_clamp = (num_splits * bps) > total_blocks
        may_need_mask = (num_splits * bps * tr) != rows_main

        p2 = p_flat[:n_main].reshape(rows_main, LANES)
        t2 = t_flat[:n_main].reshape(rows_main, LANES)

        if need_clamp:
            def in_map(c, j, _bps=bps, _last=total_blocks - 1):
                # Overhang iterations (odd block count, 2-core split) re-read
                # the last valid block; their contribution is zeroed by the
                # in-kernel row mask.
                return (jnp.minimum(c * _bps + j, _last), 0)
        else:
            def in_map(c, j, _bps=bps):
                return (c * _bps + j, 0)

        kernel = functools.partial(
            _masked_l1_sum_kernel,
            tr=tr, bps=bps, rows=rows_main, may_need_mask=may_need_mask)

        # Resident footprint: 2 inputs x 2 pipeline buffers x (tr,128).  Raise
        # the scoped VMEM limit above v5e's 16 MiB default; 32 MiB fits every
        # generation (v7x physical is 64 MiB).
        resident = 2 * 2 * tr * LANES * itemsize
        vmem_limit = int(max(32 << 20, resident + (4 << 20)))

        if use_core_split:
            # Genuinely shard the leading axis across the two TensorCores.
            dim_sem = (pltpu.CORE_PARALLEL, pltpu.ARBITRARY)
        else:
            dim_sem = (pltpu.ARBITRARY, pltpu.ARBITRARY)

        cp_kwargs = dict(dimension_semantics=dim_sem,
                         vmem_limit_bytes=vmem_limit)
        if n_main < n_total:
            # The prefix slice feeding the custom call would otherwise be a
            # materialized copy (extra HBM read+write); let XLA fuse it in.
            cp_kwargs["allow_input_fusion"] = [True, True]

        partials = pl.pallas_call(
            kernel,
            out_shape=jax.ShapeDtypeStruct(
                (num_splits, SUBLANES, LANES), jnp.float32),
            grid_spec=pltpu.PrefetchScalarGridSpec(
                num_scalar_prefetch=0,
                grid=(num_splits, bps),
                in_specs=[
                    pl.BlockSpec((tr, LANES), in_map),
                    pl.BlockSpec((tr, LANES), in_map),
                ],
                out_specs=pl.BlockSpec((1, SUBLANES, LANES),
                                       lambda c, j: (c, 0, 0)),
            ),
            compiler_params=pltpu.CompilerParams(**cp_kwargs),
        )(p2, t2)
        total = total + jnp.sum(partials, dtype=jnp.float32)

    if n_main < n_total:
        # <1024-element ragged tail: a few plain jnp ops, no full-array pad.
        p_tail = p_flat[n_main:].astype(jnp.float32)
        t_tail = t_flat[n_main:].astype(jnp.float32)
        tail_mask = (t_tail != 0.0).astype(jnp.float32)
        total = total + jnp.sum(tail_mask * jnp.abs(p_tail - t_tail))

    return total / jnp.float32(n_total)


def masked_l1_loss_ref(pred, target):
    mask = (target != 0).astype(jnp.float32)
    diff = pred.astype(jnp.float32) * mask - target.astype(jnp.float32) * mask
    return jnp.mean(jnp.abs(diff))


if __name__ == "__main__":
    key = jax.random.PRNGKey(0)

    def make_inputs(shape, k, dtype=jnp.float32):
        kp, kt, km = jax.random.split(k, 3)
        pred = jax.random.normal(kp, shape, dtype=dtype)
        target = jax.random.normal(kt, shape, dtype=dtype)
        zero = jax.random.bernoulli(km, p=0.3, shape=shape)   # non-trivial mask
        target = jnp.where(zero, jnp.zeros((), dtype), target)
        return pred, target

    k0, k1, k2 = jax.random.split(key, 3)

    # 1) Primary small NCHW demo (matches the PyTorch module's inputs).
    #    min_kernel_elems=0 forces the Pallas path even at this tiny size.
    pred, target = make_inputs((2, 4, 16, 16), k0)
    loss_fn = jax.jit(functools.partial(masked_l1_loss, min_kernel_elems=0))
    out = jax.block_until_ready(loss_fn(pred, target))
    ref = masked_l1_loss_ref(pred, target)
    assert jnp.allclose(out, ref, rtol=1e-5, atol=1e-6), (out, ref)

    # 2) Multi-block accumulation path (small tile => several grid steps).
    pred, target = make_inputs((2, 4, 64, 64), k1)
    loss_fn = jax.jit(functools.partial(
        masked_l1_loss, tile_rows=64, min_kernel_elems=0))
    out = jax.block_until_ready(loss_fn(pred, target))
    ref = masked_l1_loss_ref(pred, target)
    assert jnp.allclose(out, ref, rtol=1e-5, atol=1e-6), (out, ref)

    # 3) Ragged path: rows not a multiple of the tile + a <1024-element tail.
    pred, target = make_inputs((2, 3, 37, 53), k2)
    loss_fn = jax.jit(functools.partial(
        masked_l1_loss, tile_rows=32, min_kernel_elems=0))
    out = jax.block_until_ready(loss_fn(pred, target))
    ref = masked_l1_loss_ref(pred, target)
    assert jnp.allclose(out, ref, rtol=1e-5, atol=1e-6), (out, ref)

    print("KERNEL_OK")
</pallas_src>

<mosaic_0001>
module attributes {stable_mosaic.version = 11 : i64} {
  func.func @_masked_l1_sum_kernel(%arg0: i32, %arg1: i32, %arg2: memref<16x128xf32, #tpu.memory_space<vmem>>, %arg3: memref<16x128xf32, #tpu.memory_space<vmem>>, %arg4: memref<1x8x128xf32, #tpu.memory_space<vmem>>) attributes {dimension_semantics = [#tpu.dimension_semantics<arbitrary>, #tpu.dimension_semantics<arbitrary>], iteration_bounds = array<i64: 1, 1>, scalar_prefetch = 0 : i64, scratch_operands = 0 : i64, tpu.core_type = #tpu.core_type<tc>, window_params = [{transform_indices = @transform_0, window_bounds = array<i64: 16, 128>}, {transform_indices = @transform_1, window_bounds = array<i64: 16, 128>}, {transform_indices = @transform_2, window_bounds = array<i64: 1, 8, 128>}]} {
    %c0_i32 = arith.constant 0 : i32
    %0 = arith.cmpi eq, %arg1, %c0_i32 : i32
    %1 = arith.extui %0 : i1 to i32
    %c0_i32_0 = arith.constant 0 : i32
    %2 = arith.cmpi ne, %1, %c0_i32_0 : i32
    scf.if %2 {
      %cst_11 = arith.constant 0.000000e+00 : f32
      %18 = vector.broadcast %cst_11 : f32 to vector<1x8x128xf32>
      %c0_12 = arith.constant 0 : index
      %c0_13 = arith.constant 0 : index
      %c0_14 = arith.constant 0 : index
      %19 = vector.load %arg4[%c0_12, %c0_13, %c0_14] : memref<1x8x128xf32, #tpu.memory_space<vmem>>, vector<1x8x128xf32>
      tpu.vector_store %arg4[%c0_12, %c0_13, %c0_14], %18 {strides = array<i32>} : memref<1x8x128xf32, #tpu.memory_space<vmem>>, vector<1x8x128xf32>,
    } else {
    }
    %c0 = arith.constant 0 : index
    %c0_1 = arith.constant 0 : index
    %3 = vector.load %arg2[%c0, %c0_1] : memref<16x128xf32, #tpu.memory_space<vmem>>, vector<16x128xf32>
    %c0_2 = arith.constant 0 : index
    %c0_3 = arith.constant 0 : index
    %4 = vector.load %arg3[%c0_2, %c0_3] : memref<16x128xf32, #tpu.memory_space<vmem>>, vector<16x128xf32>
    %cst = arith.constant 0.000000e+00 : f32
    %5 = vector.broadcast %cst : f32 to vector<16x128xf32>
    %6 = arith.cmpf one, %4, %5 : vector<16x128xf32>
    %7 = arith.extui %6 : vector<16x128xi1> to vector<16x128xi32>
    %8 = arith.sitofp %7 : vector<16x128xi32> to vector<16x128xf32>
    %9 = arith.subf %3, %4 : vector<16x128xf32>
    %10 = math.absf %9 : vector<16x128xf32>
    %11 = arith.mulf %8, %10 : vector<16x128xf32>
    %12 = vector.shape_cast %11 : vector<16x128xf32> to vector<2x8x128xf32>
    %cst_4 = arith.constant dense<0.000000e+00> : vector<8x128xf32>
    %13 = vector.multi_reduction <add>, %12, %cst_4 [0] : vector<2x8x128xf32> to vector<8x128xf32>
    %c0_5 = arith.constant 0 : index
    %c0_6 = arith.constant 0 : index
    %c0_7 = arith.constant 0 : index
    %14 = vector.load %arg4[%c0_5, %c0_6, %c0_7] : memref<1x8x128xf32, #tpu.memory_space<vmem>>, vector<1x8x128xf32>
    %15 = vector.shape_cast %13 : vector<8x128xf32> to vector<1x8x128xf32>
    %16 = arith.addf %14, %15 : vector<1x8x128xf32>
    %c0_8 = arith.constant 0 : index
    %c0_9 = arith.constant 0 : index
    %c0_10 = arith.constant 0 : index
    %17 = vector.load %arg4[%c0_8, %c0_9, %c0_10] : memref<1x8x128xf32, #tpu.memory_space<vmem>>, vector<1x8x128xf32>
    tpu.vector_store %arg4[%c0_8, %c0_9, %c0_10], %16 {strides = array<i32>} : memref<1x8x128xf32, #tpu.memory_space<vmem>>, vector<1x8x128xf32>,
    return
  }
  func.func @transform_0(%arg0: i32, %arg1: i32) -> (i32, i32) {
    %c1_i32 = arith.constant 1 : i32
    %0 = arith.muli %arg0, %c1_i32 : i32
    %1 = arith.addi %0, %arg1 : i32
    %c0_i32 = arith.constant 0 : i32
    %c0_i32_0 = arith.constant 0 : i32
    return %1, %c0_i32 : i32, i32
  }
  func.func @transform_1(%arg0: i32, %arg1: i32) -> (i32, i32) {
    %c1_i32 = arith.constant 1 : i32
    %0 = arith.muli %arg0, %c1_i32 : i32
    %1 = arith.addi %0, %arg1 : i32
    %c0_i32 = arith.constant 0 : i32
    %c0_i32_0 = arith.constant 0 : i32
    return %1, %c0_i32 : i32, i32
  }
  func.func @transform_2(%arg0: i32, %arg1: i32) -> (i32, i32, i32) {
    %c0_i32 = arith.constant 0 : i32
    %c0_i32_0 = arith.constant 0 : i32
    %c0_i32_1 = arith.constant 0 : i32
    return %arg0, %c0_i32, %c0_i32_0 : i32, i32, i32
  }
}

</mosaic_0001>

<bundles_post_ra>
// kernel: masked_l1_loss.1
= control target key start
LH: loop header
LB: loop body
LE: loop exit
PB: predicated region body
PF: predicated region fallthrough
CT: control target
= control target key end

     0   :  { %v99_v5 = vmov 0.0   ;;  %s130_s0 = inlined_call_operand.vmem [shape: f32[16,128], index: 0, kind: input, shape index: {}]   ;;  %s131_s1 = inlined_call_operand.vmem [shape: f32[16,128], index: 1, kind: input, shape index: {}]   ;;  %s132_s2 = inlined_call_operand.vmem [shape: f32[1,8,128], index: 2, kind: output, shape index: {}]  }
   0x1   :  { %v60_v0 = vld [vmem:[%s130_s0] sm:$0xff]  ;;  %v61_v1 = vld [vmem:[%s130_s0 + $0x8] sm:$0xff] }
   0x2   :  { %v62_v2 = vld [vmem:[%s131_s1] sm:$0xff]  ;;  %v63_v3 = vld [vmem:[%s131_s1 + $0x8] sm:$0xff] }
   0x3   :  { %vm64_vm0 = vcmp.ne.f32.partialorder %v62_v2, 0.0  ;;  %v70_v4 = vsub.f32 %v60_v0, %v62_v2  ;;  %vm65_vm1 = vcmp.ne.f32.partialorder %v63_v3, 0.0  ;;  %v71_v7 = vsub.f32 %v61_v1, %v63_v3 }
   0x4   :  { %v96_v6 = vsel %vm64_vm0, 1.0, %v99_v5  ;;  %v97_v8 = vsel %vm65_vm1, 1.0, %v99_v5 }
   0x5   :  { %v72_v9 = vand.u32 2147483647, %v70_v4  ;;  %v73_v10 = vand.u32 2147483647, %v71_v7 }
   0x7   :  { %v74_v11 = vmul.f32 %v96_v6, %v72_v9  ;;  %v75_v12 = vmul.f32 %v97_v8, %v73_v10 }
   0x9   :  { %v76_v13 = vadd.f32 %v75_v12, %v74_v11 }
   0xb   :  { %79 = vst [vmem:[%s132_s2] sm:$0xff] %v76_v13 }

</bundles_post_ra>
